<compile_context>
chip_gen: v7x
topology: tpu7x:2x2x1
jax: 0.10.0
libtpu: 0.0.40
codegen_flags: <defaults>
</compile_context>

<pallas_src>
import jax
import jax.numpy as jnp
from jax.experimental import pallas as pl
from jax.experimental.pallas import tpu as pltpu


_VMEM_LIMIT_BYTES = 32 * 1024 * 1024   # legal on v5e (128 MiB phys) and v7x (64 MiB phys)


# ------------------------------- helpers ------------------------------------

def _round_up(n, m):
    return ((n + m - 1) // m) * m


def _pad_2d(a, rows, cols):
    r, c = a.shape
    if r == rows and c == cols:
        return a
    return jnp.pad(a, ((0, rows - r), (0, cols - c)))


def _pick_tile(dim, max_t, align=128, min_tiles=1):
    """Tile size <= max_t, multiple of `align`; keep >= min_tiles tiles when possible
    (so the parallel axis can shard across v7x's 2 TensorCores)."""
    full = _round_up(dim, align)
    t = min(max_t, full)
    if min_tiles > 1 and full > align:
        cap = _round_up(-(-full // min_tiles), align)    # ceil(full/min_tiles), aligned
        t = min(t, cap)
    return t


# ----------------------------- Pallas kernels ------------------------------

def _matmul_nt_kernel(x_ref, w_ref, o_ref):
    """out = x @ w.T  (contraction over the lane dim of both operands; no transpose)."""
    o_ref[...] = jax.lax.dot_general(
        x_ref[...], w_ref[...],
        dimension_numbers=(((1,), (1,)), ((), ())),
        preferred_element_type=jnp.float32).astype(o_ref.dtype)


def _relu_proj_kernel(x_ref, wr_ref, inn_ref):
    """inn = relu(x @ W_rand[:, m_tile])  — relu in f32, stored in compute dtype."""
    p = jax.lax.dot_general(
        x_ref[...], wr_ref[...],
        dimension_numbers=(((1,), (0,)), ((), ())),
        preferred_element_type=jnp.float32)
    inn_ref[...] = jnp.maximum(p, 0.0).astype(inn_ref.dtype)


def _matmul_nt_acc_kernel(x_ref, w_ref, o_ref, acc_ref):
    """acc += x[:, k_tile] @ w[:, k_tile].T ; finalize at the last K step."""
    k = pl.program_id(2)

    @pl.when(k == 0)
    def _():
        acc_ref[...] = jnp.zeros_like(acc_ref)

    acc_ref[...] += jax.lax.dot_general(
        x_ref[...], w_ref[...],
        dimension_numbers=(((1,), (1,)), ((), ())),
        preferred_element_type=jnp.float32)

    @pl.when(k == pl.num_programs(2) - 1)
    def _():
        o_ref[...] = acc_ref[...].astype(o_ref.dtype)


# --------------------------- head preparation -------------------------------
# Weight preprocessing is input-invariant -> done once, returns a jitted apply(x).

def prepare_cosine_head(weight, sigma, *, compute_dtype=jnp.bfloat16,
                        max_tb=128, max_tc=1024):
    C, D = weight.shape
    # Fold sigma + per-row L2 normalization of W into the weight once.
    w32 = weight.astype(jnp.float32)
    w_inv = jax.lax.rsqrt(jnp.maximum(jnp.sum(w32 * w32, axis=1, keepdims=True), 1e-24))
    w_eff = (jnp.reshape(sigma, ()).astype(jnp.float32) * w32 * w_inv).astype(compute_dtype)

    tc = _pick_tile(C, max_tc, 128, min_tiles=2)
    Dp = _round_up(D, 128)
    Cp = _round_up(C, tc)
    w_p = _pad_2d(w_eff, Cp, Dp)

    @jax.jit
    def apply(x):
        B, D_in = x.shape
        assert D_in == D
        tb = min(max_tb, _round_up(B, 8))
        Bp = _round_up(B, tb)
        # Fold torch F.normalize(x, p=2, dim=1) (eps=1e-12 on the norm) into the
        # one-shot pad/cast of x: O(B*D), vs. redoing it per C tile in-kernel.
        x32 = x.astype(jnp.float32)
        x_inv = jax.lax.rsqrt(jnp.maximum(jnp.sum(x32 * x32, axis=1, keepdims=True), 1e-24))
        x_p = _pad_2d((x32 * x_inv).astype(compute_dtype), Bp, Dp)

        out = pl.pallas_call(
            _matmul_nt_kernel,
            out_shape=jax.ShapeDtypeStruct((Bp, Cp), jnp.float32),
            grid_spec=pltpu.PrefetchScalarGridSpec(
                num_scalar_prefetch=0,
                grid=(Bp // tb, Cp // tc),
                in_specs=[pl.BlockSpec((tb, Dp), lambda i, j: (i, 0)),
                          pl.BlockSpec((tc, Dp), lambda i, j: (j, 0))],
                out_specs=pl.BlockSpec((tb, tc), lambda i, j: (i, j)),
            ),
            compiler_params=pltpu.CompilerParams(
                dimension_semantics=("parallel", "parallel"),
                vmem_limit_bytes=_VMEM_LIMIT_BYTES),
        )(x_p, w_p)
        return out[:B, :C]

    return apply


def prepare_rp_head(w_rand, weight, sigma, *, compute_dtype=jnp.bfloat16,
                    max_tb=128, max_tc=1024, max_tm=1024):
    D, M = w_rand.shape
    C, M2 = weight.shape
    assert M == M2
    # Fold sigma into the classifier weight once (input-invariant).
    w_eff = (jnp.reshape(sigma, ()).astype(jnp.float32)
             * weight.astype(jnp.float32)).astype(compute_dtype)

    Dp = _round_up(D, 128)
    # Same M tile for pass 1 (parallel axis) and pass 2 (reduction axis) so the
    # intermediate `inn` buffer tiles evenly for both kernels.
    tm = _pick_tile(M, max_tm, 128, min_tiles=2)
    Mp = _round_up(M, tm)
    tc = _pick_tile(C, max_tc, 128, min_tiles=2)
    Cp = _round_up(C, tc)

    wr_p = _pad_2d(w_rand.astype(compute_dtype), Dp, Mp)
    w_p = _pad_2d(w_eff, Cp, Mp)

    @jax.jit
    def apply(x):
        B, D_in = x.shape
        assert D_in == D
        tb = min(max_tb, _round_up(B, 8))
        Bp = _round_up(B, tb)
        x_p = _pad_2d(x.astype(compute_dtype), Bp, Dp)

        # Pass 1: inn = relu(x @ W_rand).  W_rand streamed through VMEM exactly once.
        inn = pl.pallas_call(
            _relu_proj_kernel,
            out_shape=jax.ShapeDtypeStruct((Bp, Mp), compute_dtype),
            grid_spec=pltpu.PrefetchScalarGridSpec(
                num_scalar_prefetch=0,
                grid=(Bp // tb, Mp // tm),
                in_specs=[pl.BlockSpec((tb, Dp), lambda i, j: (i, 0)),
                          pl.BlockSpec((Dp, tm), lambda i, j: (0, j))],
                out_specs=pl.BlockSpec((tb, tm), lambda i, j: (i, j)),
            ),
            compiler_params=pltpu.CompilerParams(
                dimension_semantics=("parallel", "parallel"),
                vmem_limit_bytes=_VMEM_LIMIT_BYTES),
        )(x_p, wr_p)

        # Pass 2: out = inn @ W_eff.T   (classifier weight streamed exactly once,
        # f32 accumulator over the RP dim, reduction axis last in the grid).
        out = pl.pallas_call(
            _matmul_nt_acc_kernel,
            out_shape=jax.ShapeDtypeStruct((Bp, Cp), jnp.float32),
            grid_spec=pltpu.PrefetchScalarGridSpec(
                num_scalar_prefetch=0,
                grid=(Bp // tb, Cp // tc, Mp // tm),
                in_specs=[pl.BlockSpec((tb, tm), lambda i, j, k: (i, k)),
                          pl.BlockSpec((tc, tm), lambda i, j, k: (j, k))],
                out_specs=pl.BlockSpec((tb, tc), lambda i, j, k: (i, j)),
                scratch_shapes=[pltpu.VMEM((tb, tc), jnp.float32)],
            ),
            compiler_params=pltpu.CompilerParams(
                dimension_semantics=("parallel", "parallel", "arbitrary"),
                vmem_limit_bytes=_VMEM_LIMIT_BYTES),
        )(inn, w_p)
        return out[:B, :C]

    return apply


# --------------------------------- module -----------------------------------

class NetworkPallas:
    """JAX/Pallas port of `Network` (ViT-backbone path) with a CosineLinear head."""

    def __init__(self, feature_dim, num_classes, key, compute_dtype=jnp.bfloat16):
        self.feature_dim = feature_dim
        self.num_classes = num_classes
        self.compute_dtype = compute_dtype
        # CosineLinear.reset_parameters(): uniform(-stdv, stdv), sigma = 1
        stdv = 1.0 / (feature_dim ** 0.5)
        self.weight = jax.random.uniform(
            key, (num_classes, feature_dim), jnp.float32, -stdv, stdv)
        self.sigma = jnp.ones((), jnp.float32)
        self.use_RP = False
        self.W_rand = None
        self._rebuild_head()

    def _rebuild_head(self):
        # Input-invariant weight preprocessing cached here (not redone per forward).
        if not self.use_RP:
            self._head = prepare_cosine_head(
                self.weight, self.sigma, compute_dtype=self.compute_dtype)
        else:
            self._head = prepare_rp_head(
                self.W_rand, self.weight, self.sigma, compute_dtype=self.compute_dtype)

    def enable_RP(self, rp_dim, key):
        """RanPAC: freeze a random projection, re-init the classifier over rp_dim."""
        k_wr, k_w = jax.random.split(key)
        self.W_rand = jax.random.normal(
            k_wr, (self.feature_dim, rp_dim), jnp.float32)
        stdv = 1.0 / (rp_dim ** 0.5)
        self.weight = jax.random.uniform(
            k_w, (self.num_classes, rp_dim), jnp.float32, -stdv, stdv)
        self.use_RP = True
        self._rebuild_head()

    def backbone(self, x):
        # TODO(synk): external pretrained ViT/CLIP backbone; features passed through as-is.
        return x

    def __call__(self, x, inference=False):
        features = self.backbone(x)
        return self._head(features)


# ------------------------------ pure-JAX refs -------------------------------

def _ref_cosine(x, w, sigma):
    eps = 1e-12
    xn = x / jnp.maximum(jnp.linalg.norm(x, axis=1, keepdims=True), eps)
    wn = w / jnp.maximum(jnp.linalg.norm(w, axis=1, keepdims=True), eps)
    return jnp.reshape(sigma, ()) * (xn @ wn.T)


def _ref_rp(x, w_rand, w, sigma):
    inn = jax.nn.relu(x @ w_rand)
    return jnp.reshape(sigma, ()) * (inn @ w.T)


# ----------------------------------- main -----------------------------------

if __name__ == "__main__":
    key = jax.random.PRNGKey(0)
    k_x, k_net, k_rp = jax.random.split(key, 3)

    batch, feature_dim, num_classes, rp_dim = 8, 32, 16, 64
    # x: pre-extracted backbone features, layout [B, D]
    x = jax.random.normal(k_x, (batch, feature_dim), jnp.float32)

    # Default module path: bf16 weight streaming / MXU operands, f32 accumulation.
    net = NetworkPallas(feature_dim, num_classes, k_net)

    # --- default forward (use_RP = False): cosine classifier (bf16 operands) ---
    out_cos = jax.block_until_ready(net(x))
    ref_cos = _ref_cosine(x, net.weight, net.sigma)
    assert out_cos.shape == (batch, num_classes)
    assert jnp.allclose(out_cos, ref_cos, atol=3e-2, rtol=3e-2), (
        float(jnp.max(jnp.abs(out_cos - ref_cos))))

    # --- exact f32 path check for the cosine head ---
    cos_f32 = prepare_cosine_head(net.weight, net.sigma, compute_dtype=jnp.float32)
    out_cos_f32 = jax.block_until_ready(cos_f32(x))
    assert jnp.allclose(out_cos_f32, ref_cos, atol=1e-5, rtol=1e-5), (
        float(jnp.max(jnp.abs(out_cos_f32 - ref_cos))))

    # --- RanPAC forward (use_RP = True): relu random projection + linear (bf16) ---
    net.enable_RP(rp_dim, k_rp)
    out_rp = jax.block_until_ready(net(x))
    ref_rp = _ref_rp(x, net.W_rand, net.weight, net.sigma)
    assert out_rp.shape == (batch, num_classes)
    assert jnp.allclose(out_rp, ref_rp, atol=1.5e-1, rtol=5e-2), (
        float(jnp.max(jnp.abs(out_rp - ref_rp))))

    # --- exact f32 path check for the RanPAC head ---
    rp_f32 = prepare_rp_head(net.W_rand, net.weight, net.sigma,
                             compute_dtype=jnp.float32)
    out_rp_f32 = jax.block_until_ready(rp_f32(x))
    assert jnp.allclose(out_rp_f32, ref_rp, atol=1e-4, rtol=1e-4), (
        float(jnp.max(jnp.abs(out_rp_f32 - ref_rp))))

    print("KERNEL_OK")
</pallas_src>

<mosaic_0001>
module attributes {stable_mosaic.version = 11 : i64} {
  func.func @_matmul_nt_kernel(%arg0: i32, %arg1: i32, %arg2: memref<8x128xbf16, #tpu.memory_space<vmem>>, %arg3: memref<128x128xbf16, #tpu.memory_space<vmem>>, %arg4: memref<8x128xf32, #tpu.memory_space<vmem>>) attributes {dimension_semantics = [#tpu.dimension_semantics<parallel>, #tpu.dimension_semantics<parallel>], iteration_bounds = array<i64: 1, 1>, scalar_prefetch = 0 : i64, scratch_operands = 0 : i64, tpu.core_type = #tpu.core_type<tc>, window_params = [{transform_indices = @transform_0, window_bounds = array<i64: 8, 128>}, {transform_indices = @transform_1, window_bounds = array<i64: 128, 128>}, {transform_indices = @transform_2, window_bounds = array<i64: 8, 128>}]} {
    %c0 = arith.constant 0 : index
    %c0_0 = arith.constant 0 : index
    %0 = vector.load %arg2[%c0, %c0_0] : memref<8x128xbf16, #tpu.memory_space<vmem>>, vector<8x128xbf16>
    %c0_1 = arith.constant 0 : index
    %c0_2 = arith.constant 0 : index
    %1 = vector.load %arg3[%c0_1, %c0_2] : memref<128x128xbf16, #tpu.memory_space<vmem>>, vector<128x128xbf16>
    %cst = arith.constant dense<0.000000e+00> : vector<8x128xf32>
    %2 = tpu.matmul %0, %1, %cst {dimension_numbers = #tpu.dot_dimension_numbers<[1], [1], [0], [0], [0, 0, 1, 0], [], []>} : vector<8x128xbf16>, vector<128x128xbf16>, vector<8x128xf32> -> vector<8x128xf32>
    %c0_3 = arith.constant 0 : index
    %c0_4 = arith.constant 0 : index
    %3 = vector.load %arg4[%c0_3, %c0_4] : memref<8x128xf32, #tpu.memory_space<vmem>>, vector<8x128xf32>
    tpu.vector_store %arg4[%c0_3, %c0_4], %2 {strides = array<i32>} : memref<8x128xf32, #tpu.memory_space<vmem>>, vector<8x128xf32>,
    return
  }
  func.func @transform_0(%arg0: i32, %arg1: i32) -> (i32, i32) {
    %c0_i32 = arith.constant 0 : i32
    %c0_i32_0 = arith.constant 0 : i32
    return %arg0, %c0_i32 : i32, i32
  }
  func.func @transform_1(%arg0: i32, %arg1: i32) -> (i32, i32) {
    %c0_i32 = arith.constant 0 : i32
    %c0_i32_0 = arith.constant 0 : i32
    return %arg1, %c0_i32 : i32, i32
  }
  func.func @transform_2(%arg0: i32, %arg1: i32) -> (i32, i32) {
    %c0_i32 = arith.constant 0 : i32
    return %arg0, %arg1 : i32, i32
  }
}

</mosaic_0001>

<bundles_post_ra>
// kernel: apply.1
= control target key start
LH: loop header
LB: loop body
LE: loop exit
PB: predicated region body
PF: predicated region fallthrough
CT: control target
= control target key end

     0   :  { %7 = vsyncpa [#allocation3], 0  ;;  %s295_s0 = inlined_call_operand.vmem [shape: bf16[8,128], index: 0, kind: input, shape index: {}]   ;;  %s296_s1 = inlined_call_operand.hbm [shape: bf16[128,128], index: 1, kind: input, shape index: {}]   ;;  %s297_s2 = inlined_call_operand.hbm [shape: f32[8,128], index: 2, kind: output, shape index: {}]  }
   0x1   :  { %8 = vsyncpa [#allocation4], 0  ;;  %s247_s9 = smov [#allocation2]   ;;  %s199_s13 = scalar_lea.hbm %s296_s1, 1024 }
   0x2   :  { %s16_s10 = sshll.u32 %s247_s9, 4  ;;  %p200_p0 = scmp.ne.s32.totalorder %s296_s1, %s199_s13  ;;  %s17_s10 = int_to_ptr.vmem [resolvable:$true] %s16_s10 }
   0x3   :  { %p203_p1 = scmp.lt.u32.totalorder %s199_s13, %s296_s1 }
   0x5   :  { %p205_p2 = pnand %p203_p1, %p200_p0 }
   0x7   :  { %208 = shalt.err (!%p205_p2)
}
   0x8   :  { %s209_s18 = scalar_lea.vmem %s17_s10, 1024  ;;  %p214_p4 = scmp.lt.s32.totalorder %s17_s10, %s17_s10 }
   0x9   :  { %p210_p3 = scmp.ne.s32.totalorder %s17_s10, %s209_s18  ;;  %p215_p5 = scmp.lt.s32.totalorder %s209_s18, %s209_s18 }
   0xb   :  { %p216_p6 = por %p215_p5, %p214_p4 }
   0xd   :  { %p217_p7 = pnand %p216_p6, %p210_p3 }
   0xf   :  { %220 = shalt.err (!%p217_p7)
}
  0x10   :  { %s248_s19 = smov 64   ;;  %s249_s20 = smov 4  }
  0x11   :  { %22 = dma.hbm_to_vmem [thread:$0]  %s296_s1, 1024, %s17_s10, [#allocation3], %s248_s19, %s248_s19, %s249_s20  }
  0x12   :  { %243 = dma.done.wait [#allocation3], 1024  }
  0x13   :  { %244 = vsyncadd [#allocation3], 4294966272  ;;  %v250_v0 = vmov 0.0   ;;  %vm251_vm0 = vmmov 0   ;;  %v191_v1 = vld [vmem:[#allocation2] sm:$0xff]   ;;  %v192_v2 = vld [vmem:[#allocation2 + $0x8] sm:$0xff]  }
  0x14   :  { %165 = vmatprep.subr.bf16.mxu0 %v250_v0  ;;  %181 = vmatprep.mubr.msk.bf16.mxu0 %vm251_vm0, %v250_v0  ;;  %v193_v3 = vld [vmem:[#allocation2 + $0x10] sm:$0xff]   ;;  %v194_v4 = vld [vmem:[#allocation2 + $0x18] sm:$0xff]   ;;  %v195_v5 = vld [vmem:[#allocation2 + $0x20] sm:$0xff]   ;;  %s252_s24 = smov [#allocation5]  }
  0x15   :  { %166 = vmatpush3.bf16.xpose.msra.mxu0 %v191_v1  ;;  %v196_v6 = vld [vmem:[#allocation2 + $0x28] sm:$0xff]   ;;  %v197_v7 = vld [vmem:[#allocation2 + $0x30] sm:$0xff]   ;;  %v198_v8 = vld [vmem:[#allocation2 + $0x38] sm:$0xff]   ;;  %s139_s25 = sshll.u32 %s252_s24, 4  ;;  %s140_s25 = int_to_ptr.vmem [resolvable:$true] %s139_s25 }
  0x16   :  { %167 = vmatprep.subr.bf16.mxu0 %v250_v0  ;;  %v27_v9 = vld [vmem:[%s295_s0] sm:$0xf]  ;;  %s221_s26 = scalar_lea.vmem %s140_s25, 128  ;;  %p226_p9 = scmp.lt.s32.totalorder %s140_s25, %s140_s25 }
  0x17   :  { %p222_p8 = scmp.ne.s32.totalorder %s140_s25, %s221_s26  ;;  %p227_p10 = scmp.lt.s32.totalorder %s221_s26, %s221_s26 }
  0x19   :  { %p228_p11 = por %p227_p10, %p226_p9 }
  0x1b   :  { %p229_p12 = pnand %p228_p11, %p222_p8 }
  0x1d   :  { %168 = vmatpush3.bf16.xpose.msra.mxu0 %v192_v2 }
  0x1e   :  { %169 = vmatprep.subr.bf16.mxu0 %v250_v0 }
  0x25   :  { %170 = vmatpush3.bf16.xpose.msra.mxu0 %v193_v3 }
  0x26   :  { %171 = vmatprep.subr.bf16.mxu0 %v250_v0 }
  0x2d   :  { %172 = vmatpush3.bf16.xpose.msra.mxu0 %v194_v4 }
  0x2e   :  { %173 = vmatprep.subr.bf16.mxu0 %v250_v0 }
  0x35   :  { %174 = vmatpush3.bf16.xpose.msra.mxu0 %v195_v5 }
  0x36   :  { %175 = vmatprep.subr.bf16.mxu0 %v250_v0 }
  0x3d   :  { %176 = vmatpush3.bf16.xpose.msra.mxu0 %v196_v6 }
  0x3e   :  { %177 = vmatprep.subr.bf16.mxu0 %v250_v0 }
  0x45   :  { %178 = vmatpush3.bf16.xpose.msra.mxu0 %v197_v7 }
  0x46   :  { %179 = vmatprep.subr.bf16.mxu0 %v250_v0 }
  0x4d   :  { %180 = vmatpush3.bf16.xpose.msra.mxu0 %v198_v8 }
  0x54   :  { %182 = vmatmul.mubr.bf16.vlgmr.msra.gmra.mrb[0].mxu0 %v27_v9 }
 0x127   :  { %v126_v10 = vpop.f32.mrb[0].mxu0 }
 0x128   :  { %132 = vst [vmem:[#allocation5] sm:$0xff] %v126_v10  ;;  %v183_v11 = vpop.f32.mrb[1].mxu0 }
 0x129   :  { %v129_v12 = vpop.f32.mrb[2].mxu0 }
 0x12a   :  { %232 = shalt.err (!%p229_p12)
}
 0x12b   :  { %s233_s29 = scalar_lea.hbm %s297_s2, 128 }
 0x12c   :  { %p234_p13 = scmp.ne.s32.totalorder %s297_s2, %s233_s29  ;;  %p237_p0 = scmp.lt.u32.totalorder %s233_s29, %s297_s2 }
 0x12e   :  { %p239_p1 = pnand %p237_p0, %p234_p13 }
 0x130   :  { %242 = shalt.err (!%p239_p1)
}
 0x131   :  { %142 = dma.vmem_to_hbm [thread:$0]  %s140_s25, 128, %s297_s2, [#allocation4]   ;;  %v184_v13 = vpop.f32.mrb[3].mxu0 }
 0x132   :  { %245 = dma.done.wait [#allocation4], 128  }
 0x133   :  { %246 = vsyncadd [#allocation4], 4294967168 }
 0x134   :  { %146 = vsyncpa [#allocation3], 1 }
 0x135   :  { %147 = vsyncpa [#allocation4], 1 }

</bundles_post_ra>
